<compile_context>
chip_gen: v5e
topology: v5e:2x2
jax: 0.10.0
libtpu: 0.0.40
codegen_flags: <defaults>
</compile_context>

<pallas_src>
import functools

import jax
import jax.numpy as jnp
from jax.experimental import pallas as pl
from jax.experimental.pallas import tpu as pltpu


def _round_up(x, m):
    return (x + m - 1) // m * m


def _embrace_wrapper_kernel(e_pad,
                            x_ref, avs_ref, u_ref,
                            wd_ref, bd_ref, wc_ref, bc_ref,
                            out_ref):
    # ---- fused docking: one (TB, K_PAD) @ (K_PAD, 3*E_PAD) bf16 MXU matmul ----
    d = jnp.dot(x_ref[...], wd_ref[...], preferred_element_type=jnp.float32)
    d = jnp.maximum(d + bd_ref[...], 0.0)                  # (TB, 3*E_PAD) f32
    d0 = d[:, 0 * e_pad:1 * e_pad]
    d1 = d[:, 1 * e_pad:2 * e_pad]
    d2 = d[:, 2 * e_pad:3 * e_pad]

    # ---- selection thresholds (per-row scalars only; guard psum == 0) ----
    avs = avs_ref[...]                                     # (TB, 3) f32
    a0 = avs[:, 0:1]
    a1 = avs[:, 1:2]
    a2 = avs[:, 2:3]
    inv = 1.0 / jnp.maximum(a0 + a1 + a2, 1e-12)           # (TB, 1)
    t0 = a0 * inv
    t1 = (a0 + a1) * inv

    # ---- multinomial(replacement=True) via inverse CDF on external uniforms ----
    u = u_ref[...]                                         # (TB, E_PAD), [0,1)
    pick0 = u < t0
    pick1 = jnp.logical_and(u >= t0, u < t1)
    emb = jnp.where(pick0, d0, jnp.where(pick1, d1, d2))   # (TB, E_PAD) f32

    # ---- classifier: Linear + Softmax (padded classes carry bias -1e30) ----
    logits = jnp.dot(emb.astype(jnp.bfloat16), wc_ref[...],
                     preferred_element_type=jnp.float32) + bc_ref[...]
    logits = logits - jnp.max(logits, axis=-1, keepdims=True)
    e = jnp.exp(logits)
    out_ref[...] = e * (1.0 / jnp.sum(e, axis=-1, keepdims=True))


@functools.partial(jax.jit, static_argnames=("embrace", "n_classes", "batch_tile"))
def wrapper_forward(face, audio, text, avs, params, key, *,
                    embrace=100, n_classes=6, batch_tile=1024):
    """EmbraceNet Wrapper forward. Returns (B, n_classes) class probabilities."""
    batch = face.shape[0]
    sizes = (face.shape[1], audio.shape[1], text.shape[1])
    k_total = sum(sizes)

    e_pad = _round_up(embrace, 128)      # lane-dense embracement width
    c_pad = _round_up(n_classes, 128)    # lane-dense class width
    k_pad = _round_up(k_total, 128)      # clean MXU contraction

    # Batch tile: biggest useful tile, multiple of 8 sublanes, <= batch_tile.
    # (batch_tile default 1024 is sized for v7x's 64 MiB VMEM; on v5e/v6e a
    #  larger value such as 2048-4096 can be passed.)
    tb = min(batch_tile, _round_up(batch, 8))
    tb = _round_up(tb, 8)
    b_pad = _round_up(batch, tb)

    # --- activations: concat modalities, pad, cast matmul operands to bf16 ---
    x_cat = jnp.concatenate([face, audio, text], axis=1)
    x_cat = jnp.pad(x_cat, ((0, b_pad - batch), (0, k_pad - k_total)))
    x_cat = x_cat.astype(jnp.bfloat16)
    avs_p = jnp.pad(avs.astype(jnp.float32), ((0, b_pad - batch), (0, 0)),
                    constant_values=1.0)
    # Uniform draws generated with jax.random (TPU hardware PRNG primitives
    # have no interpret/CPU lowering); one independent draw per (row, slot).
    u = jax.random.uniform(key, (b_pad, e_pad), jnp.float32)

    # --- weights: block-diagonal fused docking + zero/-inf padded classifier ---
    wd = jnp.zeros((k_pad, 3 * e_pad), jnp.float32)
    bd = jnp.zeros((1, 3 * e_pad), jnp.float32)
    off = 0
    for i, sz in enumerate(sizes):
        wd = wd.at[off:off + sz, i * e_pad:i * e_pad + embrace].set(params[f"w{i}"])
        bd = bd.at[:, i * e_pad:i * e_pad + embrace].set(params[f"b{i}"])
        off += sz
    wc = jnp.zeros((e_pad, c_pad), jnp.float32)
    wc = wc.at[:embrace, :n_classes].set(params["wc"])
    bc = jnp.full((1, c_pad), -1e30, jnp.float32)       # padded classes -> ~0 prob
    bc = bc.at[:, :n_classes].set(params["bc"])
    wd = wd.astype(jnp.bfloat16)
    wc = wc.astype(jnp.bfloat16)

    kernel = functools.partial(_embrace_wrapper_kernel, e_pad)

    out = pl.pallas_call(
        kernel,
        out_shape=jax.ShapeDtypeStruct((b_pad, c_pad), jnp.float32),
        grid=(b_pad // tb,),
        in_specs=[
            pl.BlockSpec((tb, k_pad), lambda i: (i, 0)),          # x_cat
            pl.BlockSpec((tb, 3), lambda i: (i, 0)),              # availabilities
            pl.BlockSpec((tb, e_pad), lambda i: (i, 0)),          # uniforms
            pl.BlockSpec((k_pad, 3 * e_pad), lambda i: (0, 0)),   # docking W (resident)
            pl.BlockSpec((1, 3 * e_pad), lambda i: (0, 0)),       # docking b
            pl.BlockSpec((e_pad, c_pad), lambda i: (0, 0)),       # classifier W
            pl.BlockSpec((1, c_pad), lambda i: (0, 0)),           # classifier b
        ],
        out_specs=pl.BlockSpec((tb, c_pad), lambda i: (i, 0)),
        compiler_params=pltpu.CompilerParams(
            dimension_semantics=("parallel",),
            vmem_limit_bytes=32 * 1024 * 1024),
    )(x_cat, avs_p, u, wd, bd, wc, bc)

    return out[:batch, :n_classes]


def init_params(key, size_list=(6, 6, 6), embrace=100, n_classes=6):
    """Deterministic init mimicking nn.Linear (uniform +-1/sqrt(fan_in))."""
    params = {}
    keys = jax.random.split(key, 2 * len(size_list) + 2)
    for i, in_sz in enumerate(size_list):
        bound = 1.0 / jnp.sqrt(in_sz)
        params[f"w{i}"] = jax.random.uniform(
            keys[2 * i], (in_sz, embrace), jnp.float32, -bound, bound)
        params[f"b{i}"] = jax.random.uniform(
            keys[2 * i + 1], (1, embrace), jnp.float32, -bound, bound)
    bound = 1.0 / jnp.sqrt(embrace)
    params["wc"] = jax.random.uniform(
        keys[-2], (embrace, n_classes), jnp.float32, -bound, bound)
    params["bc"] = jax.random.uniform(
        keys[-1], (1, n_classes), jnp.float32, -bound, bound)
    return params


if __name__ == "__main__":
    key = jax.random.PRNGKey(0)
    k_face, k_audio, k_text, k_params, k_sample = jax.random.split(key, 5)

    batch = 2
    size_list = (6, 6, 6)
    embrace = 100
    n_classes = 6

    face = jax.random.normal(k_face, (batch, size_list[0]), jnp.float32)
    audio = jax.random.normal(k_audio, (batch, size_list[1]), jnp.float32)
    text = jax.random.normal(k_text, (batch, size_list[2]), jnp.float32)
    # availabilities: all modalities available (float, as PyTorch .float())
    avs = jnp.ones((batch, 3), jnp.float32)

    params = init_params(k_params, size_list, embrace, n_classes)

    out = wrapper_forward(face, audio, text, avs, params, k_sample,
                          embrace=embrace, n_classes=n_classes)
    out = jax.block_until_ready(out)

    assert out.shape == (batch, n_classes)
    assert bool(jnp.all(jnp.isfinite(out)))
    # rows of a softmax must sum to ~1
    assert bool(jnp.allclose(jnp.sum(out, axis=-1), 1.0, atol=1e-4))

    print("KERNEL_OK")
</pallas_src>

<mosaic_0001>
module attributes {stable_mosaic.version = 11 : i64} {
  func.func @_embrace_wrapper_kernel(%arg0: i32, %arg1: memref<8x128xbf16, #tpu.memory_space<vmem>>, %arg2: memref<8x3xf32, #tpu.memory_space<vmem>>, %arg3: memref<8x128xf32, #tpu.memory_space<vmem>>, %arg4: memref<128x384xbf16, #tpu.memory_space<vmem>>, %arg5: memref<1x384xf32, #tpu.memory_space<vmem>>, %arg6: memref<128x128xbf16, #tpu.memory_space<vmem>>, %arg7: memref<1x128xf32, #tpu.memory_space<vmem>>, %arg8: memref<8x128xf32, #tpu.memory_space<vmem>>) attributes {dimension_semantics = [#tpu.dimension_semantics<parallel>], iteration_bounds = array<i64: 1>, scalar_prefetch = 0 : i64, scratch_operands = 0 : i64, tpu.core_type = #tpu.core_type<tc>, window_params = [{transform_indices = @transform_0, window_bounds = array<i64: 8, 128>}, {transform_indices = @transform_1, window_bounds = array<i64: 8, 3>}, {transform_indices = @transform_2, window_bounds = array<i64: 8, 128>}, {pipeline_mode = #tpu.pipeline_mode<synchronous>, transform_indices = @transform_3, window_bounds = array<i64: 128, 384>}, {pipeline_mode = #tpu.pipeline_mode<synchronous>, transform_indices = @transform_4, window_bounds = array<i64: 1, 384>}, {pipeline_mode = #tpu.pipeline_mode<synchronous>, transform_indices = @transform_5, window_bounds = array<i64: 128, 128>}, {pipeline_mode = #tpu.pipeline_mode<synchronous>, transform_indices = @transform_6, window_bounds = array<i64: 1, 128>}, {transform_indices = @transform_7, window_bounds = array<i64: 8, 128>}]} {
    %c0 = arith.constant 0 : index
    %c0_0 = arith.constant 0 : index
    %0 = vector.load %arg1[%c0, %c0_0] : memref<8x128xbf16, #tpu.memory_space<vmem>>, vector<8x128xbf16>
    %c0_1 = arith.constant 0 : index
    %c0_2 = arith.constant 0 : index
    %1 = vector.load %arg4[%c0_1, %c0_2] : memref<128x384xbf16, #tpu.memory_space<vmem>>, vector<128x384xbf16>
    %cst = arith.constant dense<0.000000e+00> : vector<8x384xf32>
    %2 = tpu.matmul %0, %1, %cst {dimension_numbers = #tpu.dot_dimension_numbers<[1], [0], [0], [1], [0, 0, 1, 1], [], []>} : vector<8x128xbf16>, vector<128x384xbf16>, vector<8x384xf32> -> vector<8x384xf32>
    %c0_3 = arith.constant 0 : index
    %c0_4 = arith.constant 0 : index
    %3 = vector.load %arg5[%c0_3, %c0_4] : memref<1x384xf32, #tpu.memory_space<vmem>>, vector<1x384xf32>
    %4 = vector.broadcast %3 : vector<1x384xf32> to vector<8x384xf32>
    %5 = arith.addf %2, %4 : vector<8x384xf32>
    %cst_5 = arith.constant 0.000000e+00 : f32
    %6 = vector.broadcast %cst_5 : f32 to vector<8x384xf32>
    %7 = arith.maximumf %5, %6 : vector<8x384xf32>
    %8 = vector.extract_strided_slice %7 {offsets = [0, 0], sizes = [8, 128], strides = [1, 1]} : vector<8x384xf32> to vector<8x128xf32>
    %9 = vector.extract_strided_slice %7 {offsets = [0, 128], sizes = [8, 128], strides = [1, 1]} : vector<8x384xf32> to vector<8x128xf32>
    %10 = vector.extract_strided_slice %7 {offsets = [0, 256], sizes = [8, 128], strides = [1, 1]} : vector<8x384xf32> to vector<8x128xf32>
    %c0_6 = arith.constant 0 : index
    %c0_7 = arith.constant 0 : index
    %11 = vector.load %arg2[%c0_6, %c0_7] : memref<8x3xf32, #tpu.memory_space<vmem>>, vector<8x3xf32>
    %12 = vector.extract_strided_slice %11 {offsets = [0, 0], sizes = [8, 1], strides = [1, 1]} : vector<8x3xf32> to vector<8x1xf32>
    %13 = vector.extract_strided_slice %11 {offsets = [0, 1], sizes = [8, 1], strides = [1, 1]} : vector<8x3xf32> to vector<8x1xf32>
    %14 = vector.extract_strided_slice %11 {offsets = [0, 2], sizes = [8, 1], strides = [1, 1]} : vector<8x3xf32> to vector<8x1xf32>
    %15 = arith.addf %12, %13 : vector<8x1xf32>
    %16 = arith.addf %15, %14 : vector<8x1xf32>
    %cst_8 = arith.constant 9.99999996E-13 : f32
    %17 = vector.broadcast %cst_8 : f32 to vector<8x1xf32>
    %18 = arith.maximumf %16, %17 : vector<8x1xf32>
    %cst_9 = arith.constant 1.000000e+00 : f32
    %19 = vector.broadcast %cst_9 : f32 to vector<8x1xf32>
    %20 = arith.divf %19, %18 : vector<8x1xf32>
    %21 = arith.mulf %12, %20 : vector<8x1xf32>
    %22 = arith.addf %12, %13 : vector<8x1xf32>
    %23 = arith.mulf %22, %20 : vector<8x1xf32>
    %c0_10 = arith.constant 0 : index
    %c0_11 = arith.constant 0 : index
    %24 = vector.load %arg3[%c0_10, %c0_11] : memref<8x128xf32, #tpu.memory_space<vmem>>, vector<8x128xf32>
    %25 = vector.broadcast %21 : vector<8x1xf32> to vector<8x128xf32>
    %26 = arith.cmpf olt, %24, %25 : vector<8x128xf32>
    %27 = vector.broadcast %21 : vector<8x1xf32> to vector<8x128xf32>
    %28 = arith.cmpf oge, %24, %27 : vector<8x128xf32>
    %29 = vector.broadcast %23 : vector<8x1xf32> to vector<8x128xf32>
    %30 = arith.cmpf olt, %24, %29 : vector<8x128xf32>
    %31 = arith.andi %28, %30 : vector<8x128xi1>
    %32 = arith.select %31, %9, %10 : vector<8x128xi1>, vector<8x128xf32>
    %33 = arith.select %26, %8, %32 : vector<8x128xi1>, vector<8x128xf32>
    %34 = arith.truncf %33 : vector<8x128xf32> to vector<8x128xbf16>
    %c0_12 = arith.constant 0 : index
    %c0_13 = arith.constant 0 : index
    %35 = vector.load %arg6[%c0_12, %c0_13] : memref<128x128xbf16, #tpu.memory_space<vmem>>, vector<128x128xbf16>
    %cst_14 = arith.constant dense<0.000000e+00> : vector<8x128xf32>
    %36 = tpu.matmul %34, %35, %cst_14 {dimension_numbers = #tpu.dot_dimension_numbers<[1], [0], [0], [1], [0, 0, 1, 1], [], []>} : vector<8x128xbf16>, vector<128x128xbf16>, vector<8x128xf32> -> vector<8x128xf32>
    %c0_15 = arith.constant 0 : index
    %c0_16 = arith.constant 0 : index
    %37 = vector.load %arg7[%c0_15, %c0_16] : memref<1x128xf32, #tpu.memory_space<vmem>>, vector<1x128xf32>
    %38 = vector.broadcast %37 : vector<1x128xf32> to vector<8x128xf32>
    %39 = arith.addf %36, %38 : vector<8x128xf32>
    %cst_17 = arith.constant dense<0xFF800000> : vector<8xf32>
    %40 = vector.multi_reduction <maximumf>, %39, %cst_17 [1] : vector<8x128xf32> to vector<8xf32>
    %41 = vector.shape_cast %40 : vector<8xf32> to vector<8x1xf32>
    %42 = vector.broadcast %41 : vector<8x1xf32> to vector<8x128xf32>
    %43 = arith.subf %39, %42 : vector<8x128xf32>
    %44 = math.exp %43 : vector<8x128xf32>
    %cst_18 = arith.constant dense<0.000000e+00> : vector<8xf32>
    %45 = vector.multi_reduction <add>, %44, %cst_18 [1] : vector<8x128xf32> to vector<8xf32>
    %46 = vector.shape_cast %45 : vector<8xf32> to vector<8x1xf32>
    %cst_19 = arith.constant 1.000000e+00 : f32
    %47 = vector.broadcast %cst_19 : f32 to vector<8x1xf32>
    %48 = arith.divf %47, %46 : vector<8x1xf32>
    %49 = vector.broadcast %48 : vector<8x1xf32> to vector<8x128xf32>
    %50 = arith.mulf %44, %49 : vector<8x128xf32>
    %c0_20 = arith.constant 0 : index
    %c0_21 = arith.constant 0 : index
    %51 = vector.load %arg8[%c0_20, %c0_21] : memref<8x128xf32, #tpu.memory_space<vmem>>, vector<8x128xf32>
    tpu.vector_store %arg8[%c0_20, %c0_21], %50 {strides = array<i32>} : memref<8x128xf32, #tpu.memory_space<vmem>>, vector<8x128xf32>,
    return
  }
  func.func @transform_0(%arg0: i32) -> (i32, i32) {
    %c0_i32 = arith.constant 0 : i32
    %c0_i32_0 = arith.constant 0 : i32
    return %arg0, %c0_i32 : i32, i32
  }
  func.func @transform_1(%arg0: i32) -> (i32, i32) {
    %c0_i32 = arith.constant 0 : i32
    %c0_i32_0 = arith.constant 0 : i32
    return %arg0, %c0_i32 : i32, i32
  }
  func.func @transform_2(%arg0: i32) -> (i32, i32) {
    %c0_i32 = arith.constant 0 : i32
    %c0_i32_0 = arith.constant 0 : i32
    return %arg0, %c0_i32 : i32, i32
  }
  func.func @transform_3(%arg0: i32) -> (i32, i32) {
    %c0_i32 = arith.constant 0 : i32
    %c0_i32_0 = arith.constant 0 : i32
    %c0_i32_1 = arith.constant 0 : i32
    return %c0_i32, %c0_i32_0 : i32, i32
  }
  func.func @transform_4(%arg0: i32) -> (i32, i32) {
    %c0_i32 = arith.constant 0 : i32
    %c0_i32_0 = arith.constant 0 : i32
    %c0_i32_1 = arith.constant 0 : i32
    return %c0_i32, %c0_i32_0 : i32, i32
  }
  func.func @transform_5(%arg0: i32) -> (i32, i32) {
    %c0_i32 = arith.constant 0 : i32
    %c0_i32_0 = arith.constant 0 : i32
    %c0_i32_1 = arith.constant 0 : i32
    return %c0_i32, %c0_i32_0 : i32, i32
  }
  func.func @transform_6(%arg0: i32) -> (i32, i32) {
    %c0_i32 = arith.constant 0 : i32
    %c0_i32_0 = arith.constant 0 : i32
    %c0_i32_1 = arith.constant 0 : i32
    return %c0_i32, %c0_i32_0 : i32, i32
  }
  func.func @transform_7(%arg0: i32) -> (i32, i32) {
    %c0_i32 = arith.constant 0 : i32
    %c0_i32_0 = arith.constant 0 : i32
    return %arg0, %c0_i32 : i32, i32
  }
}

</mosaic_0001>

<bundles_post_ra>
// kernel: wrapper_forward.1
= control target key start
LH: loop header
LB: loop body
LE: loop exit
PB: predicated region body
PF: predicated region fallthrough
CT: control target
= control target key end

     0   :  { %s564_s30 = smov 127   ;;  %s565_s19 = smov 126   ;;  %s799_s1 = inlined_call_operand.vmem [shape: f32[8,3], index: 1, kind: input, shape index: {}]   ;;  %s800_s3 = inlined_call_operand.vmem [shape: bf16[128,384], index: 3, kind: input, shape index: {}]   ;;  %s801_s0 = inlined_call_operand.vmem [shape: bf16[8,128], index: 0, kind: input, shape index: {}]   ;;  %s802_s5 = inlined_call_operand.vmem [shape: bf16[128,128], index: 5, kind: input, shape index: {}]   ;;  %s803_s6 = inlined_call_operand.vmem [shape: f32[1,128], index: 6, kind: input, shape index: {}]   ;;  %s804_s4 = inlined_call_operand.vmem [shape: f32[1,384], index: 4, kind: input, shape index: {}]   ;;  %s805_s2 = inlined_call_operand.vmem [shape: f32[8,128], index: 2, kind: input, shape index: {}]   ;;  %s806_s7 = inlined_call_operand.vmem [shape: f32[8,128], index: 7, kind: output, shape index: {}]  }
   0x1   :  { %v610_v0 = vld [vmem:[%s799_s1] sm:$0xff]  ;;  %v486_v1 = vld [vmem:[%s800_s3 + $0xb0] sm:$0xf]  ;;  %v543_v2 = vld [vmem:[%s800_s3 + $0xb8] sm:$0xf0] }
   0x2   :  { %239 = vrot.lane.b32.xlu0 %v610_v0, %s564_s30  ;;  %v487_v3 = vor.u32 %v543_v2, %v486_v1  ;;  %v474_v4 = vld [vmem:[%s800_s3 + $0x98] sm:$0xf]  ;;  %v540_v5 = vld [vmem:[%s800_s3 + $0xa0] sm:$0xf0]  ;;  %v541_v6 = vld [vmem:[%s800_s3 + $0xac] sm:$0xf] }
   0x3   :  { %v480_v7 = vld [vmem:[%s800_s3 + $0xb4] sm:$0xf0]  ;;  %v478_v8 = vld [vmem:[%s800_s3 + $0xa8] sm:$0xf]  ;;  %v542_v9 = vld [vmem:[%s800_s3 + $0xb0] sm:$0xf0]  ;;  %v475_v10 = vor.u32 %v540_v5, %v474_v4 }
   0x4   :  { %221 = vmatpush.bf16.msra.mxu2 %v487_v3  ;;  %v483_v11 = vor.u32 %v541_v6, %v480_v7  ;;  %v479_v12 = vor.u32 %v542_v9, %v478_v8  ;;  %v462_v13 = vld [vmem:[%s800_s3 + $0x80] sm:$0xf]  ;;  %v537_v14 = vld [vmem:[%s800_s3 + $0x88] sm:$0xf0]  ;;  %v538_v15 = vld [vmem:[%s800_s3 + $0x94] sm:$0xf] }
   0x5   :  { %v468_v16 = vld [vmem:[%s800_s3 + $0x9c] sm:$0xf0]  ;;  %v466_v17 = vld [vmem:[%s800_s3 + $0x90] sm:$0xf]  ;;  %v539_v18 = vld [vmem:[%s800_s3 + $0x98] sm:$0xf0]  ;;  %v463_v23 = vor.u32 %v537_v14, %v462_v13 }
   0x6   :  { %208 = vmatpush.bf16.msra.mxu1 %v483_v11  ;;  %195 = vmatpush.bf16.msra.mxu0 %v479_v12  ;;  %v471_v19 = vor.u32 %v538_v15, %v468_v16  ;;  %v467_v20 = vor.u32 %v539_v18, %v466_v17  ;;  %v535_v21 = vld [vmem:[%s800_s3 + $0x7c] sm:$0xf]  ;;  %v456_v22 = vld [vmem:[%s800_s3 + $0x84] sm:$0xf0]  ;;  %v454_v24 = vld [vmem:[%s800_s3 + $0x78] sm:$0xf] }
   0x7   :  { %v536_v25 = vld [vmem:[%s800_s3 + $0x80] sm:$0xf0]  ;;  %v450_v26 = vld [vmem:[%s800_s3 + $0x68] sm:$0xf]  ;;  %v534_v27 = vld [vmem:[%s800_s3 + $0x70] sm:$0xf0]  ;;  %v459_v28 = vor.u32 %v535_v21, %v456_v22 }
   0x8   :  { %222 = vmatpush.bf16.msra.mxu2 %v475_v10  ;;  %v455_v29 = vor.u32 %v536_v25, %v454_v24  ;;  %v532_v30 = vld [vmem:[%s800_s3 + $0x64] sm:$0xf]  ;;  %v444_v31 = vld [vmem:[%s800_s3 + $0x6c] sm:$0xf0]  ;;  %v451_v32 = vor.u32 %v534_v27, %v450_v26  ;;  %v531_v34 = vld [vmem:[%s800_s3 + $0x58] sm:$0xf0] }
   0x9   :  { %v438_v33 = vld [vmem:[%s800_s3 + $0x50] sm:$0xf]  ;;  %v447_v35 = vor.u32 %v532_v30, %v444_v31  ;;  %v442_v37 = vld [vmem:[%s800_s3 + $0x60] sm:$0xf]  ;;  %v533_v38 = vld [vmem:[%s800_s3 + $0x68] sm:$0xf0] }
   0xa   :  { %243 = vrot.lane.b32.xlu0 %v610_v0, %s565_s19  ;;  %209 = vmatpush.bf16.msra.mxu1 %v471_v19  ;;  %v439_v36 = vor.u32 %v531_v34, %v438_v33  ;;  %v443_v39 = vor.u32 %v533_v38, %v442_v37  ;;  %v426_v40 = vld [vmem:[%s800_s3 + $0x38] sm:$0xf]  ;;  %v528_v41 = vld [vmem:[%s800_s3 + $0x40] sm:$0xf0]  ;;  %v529_v43 = vld [vmem:[%s800_s3 + $0x4c] sm:$0xf] }
   0xb   :  { %196 = vmatpush.bf16.msra.mxu0 %v467_v20  ;;  %v427_v42 = vor.u32 %v528_v41, %v426_v40  ;;  %v432_v44 = vld [vmem:[%s800_s3 + $0x54] sm:$0xf0]  ;;  %v430_v45 = vld [vmem:[%s800_s3 + $0x48] sm:$0xf]  ;;  %v530_v47 = vld [vmem:[%s800_s3 + $0x50] sm:$0xf0] }
   0xc   :  { %223 = vmatpush.bf16.msra.mxu2 %v463_v23  ;;  %v435_v46 = vor.u32 %v529_v43, %v432_v44  ;;  %v414_v48 = vld [vmem:[%s800_s3 + $0x20] sm:$0xf]  ;;  %v525_v49 = vld [vmem:[%s800_s3 + $0x28] sm:$0xf0]  ;;  %v431_v50 = vor.u32 %v530_v47, %v430_v45  ;;  %v526_v52 = vld [vmem:[%s800_s3 + $0x34] sm:$0xf] }
   0xd   :  { %v415_v51 = vor.u32 %v525_v49, %v414_v48  ;;  %v420_v53 = vld [vmem:[%s800_s3 + $0x3c] sm:$0xf0]  ;;  %v418_v55 = vld [vmem:[%s800_s3 + $0x30] sm:$0xf]  ;;  %v527_v56 = vld [vmem:[%s800_s3 + $0x38] sm:$0xf0] }
   0xe   :  { %210 = vmatpush.bf16.msra.mxu1 %v459_v28  ;;  %v423_v54 = vor.u32 %v526_v52, %v420_v53  ;;  %v419_v57 = vor.u32 %v527_v56, %v418_v55  ;;  %v402_v58 = vld [vmem:[%s800_s3 + $0x8] sm:$0xf]  ;;  %v522_v59 = vld [vmem:[%s800_s3 + $0x10] sm:$0xf0]  ;;  %v523_v61 = vld [vmem:[%s800_s3 + $0x1c] sm:$0xf] }
   0xf   :  { %197 = vmatpush.bf16.msra.mxu0 %v455_v29  ;;  %v403_v60 = vor.u32 %v522_v59, %v402_v58  ;;  %v408_v62 = vld [vmem:[%s800_s3 + $0x24] sm:$0xf0]  ;;  %v406_v1 = vld [vmem:[%s800_s3 + $0x18] sm:$0xf]  ;;  %v524_v2 = vld [vmem:[%s800_s3 + $0x20] sm:$0xf0] }
  0x10   :  { %224 = vmatpush.bf16.msra.mxu2 %v451_v32  ;;  %v411_v63 = vor.u32 %v523_v61, %v408_v62  ;;  %v407_v3 = vor.u32 %v524_v2, %v406_v1  ;;  %v26_v4 = vld [vmem:[%s801_s0] sm:$0xf]  ;;  %v520_v5 = vld [vmem:[%s800_s3 + $0x4] sm:$0xf]  ;;  %v396_v6 = vld [vmem:[%s800_s3 + $0xc] sm:$0xf0] }
  0x11   :  { %v399_v7 = vor.u32 %v520_v5, %v396_v6  ;;  %v394_v8 = vld [vmem:[%s800_s3] sm:$0xf]  ;;  %v521_v9 = vld [vmem:[%s800_s3 + $0x8] sm:$0xf0]  ;;  %v566_v11 = vmov 0   ;;  %v551_v15 = vld [vmem:[%s802_s5 + $0x38] sm:$0xff] }
  0x12   :  { %211 = vmatpush.bf16.msra.mxu1 %v447_v35  ;;  %v395_v10 = vor.u32 %v521_v9, %v394_v8  ;;  %555 = vset.pattern.permute.xlu1 %v566_v11  ;;  %v550_v17 = vld [vmem:[%s802_s5 + $0x30] sm:$0xff]  ;;  %v549_v19 = vld [vmem:[%s802_s5 + $0x28] sm:$0xff]  ;;  %v548_v20 = vld [vmem:[%s802_s5 + $0x20] sm:$0xff] }
  0x13   :  { %198 = vmatpush.bf16.msra.mxu0 %v443_v39  ;;  %556 = vset.pattern.permute.xlu0 %v566_v11  ;;  %v547_v33 = vld [vmem:[%s802_s5 + $0x18] sm:$0xff]  ;;  %v546_v37 = vld [vmem:[%s802_s5 + $0x10] sm:$0xff]  ;;  %v544_v41 = vld [vmem:[%s802_s5] sm:$0xff] }
  0x14   :  { %225 = vmatpush.bf16.msra.mxu2 %v439_v36  ;;  %351 = vmatpush.bf16.msra.mxu3 %v551_v15  ;;  %v557_v58 = vld [vmem:[%s803_s6] ss:$0 sm:$0xff] }
  0x16   :  { %212 = vmatpush.bf16.msra.mxu1 %v435_v46 }
  0x17   :  { %199 = vmatpush.bf16.msra.mxu0 %v431_v50  ;;  %v265_v50 = vld [vmem:[%s805_s2] sm:$0xff] }
  0x18   :  { %226 = vmatpush.bf16.msra.mxu2 %v427_v42  ;;  %352 = vmatpush.bf16.msra.mxu3 %v550_v17  ;;  %v59_v42 = vld [vmem:[%s804_s4] sm:$0x7] }
  0x19   :  { %v62_v43 = vperm.slane %v59_v42, 1  ;;  %v63_v44 = vperm.slane %v59_v42, 2  ;;  %v61_v45 = vperm.slane %v59_v42, 0 }
  0x1a   :  { %213 = vmatpush.bf16.msra.mxu1 %v423_v54 }
  0x1b   :  { %200 = vmatpush.bf16.msra.mxu0 %v419_v57 }
  0x1c   :  { %227 = vmatpush.bf16.msra.mxu2 %v415_v51  ;;  %353 = vmatpush.bf16.msra.mxu3 %v549_v19 }
  0x1e   :  { %214 = vmatpush.bf16.msra.mxu1 %v411_v63 }
  0x1f   :  { %201 = vmatpush.bf16.msra.mxu0 %v407_v3 }
  0x20   :  { %228 = vmatpush.bf16.msra.mxu2 %v403_v60  ;;  %354 = vmatpush.bf16.msra.mxu3 %v548_v20 }
  0x22   :  { %215 = vmatpush.bf16.msra.mxu1 %v399_v7 }
  0x23   :  { %229 = vmatmul.bf16.vlgmr.msra.gmra.mxu2 %v26_v4  ;;  %202 = vmatpush.bf16.msra.mxu0 %v395_v10 }
  0x24   :  { %355 = vmatpush.bf16.msra.mxu3 %v547_v33 }
  0x25   :  { %216 = vmatmul.bf16.vlgmr.msra.gmra.mxu1 %v26_v4 }
  0x26   :  { %203 = vmatmul.bf16.vlgmr.msra.gmra.mxu0 %v26_v4 }
  0x28   :  { %356 = vmatpush.bf16.msra.mxu3 %v546_v37 }
  0x74   :  { %v240_v12 = vpop.permute.xlu0 %239 }
  0x75   :  { %v242_v13 = vadd.f32 %v240_v12, %v610_v0 }
  0x7c   :  { %v244_v14 = vpop.permute.xlu0 %243 }
  0x7d   :  { %v246_v16 = vadd.f32 %v244_v14, %v242_v13 }
  0x7f   :  { %v247_v18 = vmax.f32 %v246_v16, 1e-12 }
  0x81   :  { %558 = vrcp.f32 %v247_v18  ;;  %v259_v24 = vand.u32 2147483648, %v247_v18  ;;  %v257_v26 = vand.u32 2147483647, %v247_v18  ;;  %vm253_vm1 = vweird.f32 %v247_v18 }
  0x83   :  { %v260_v28 = vor.u32 1.1754944e-38, %v259_v24  ;;  %vm258_vm3 = vcmp.eq.f32.partialorder %v257_v26, 8.507059e+37 }
  0x87   :  { %v559_v21 = vpop.eup %558 }
  0x88   :  { %v249_v22 = vmul.f32 %v559_v21, %v247_v18  ;;  %vm254_vm0 = vweird.f32 %v559_v21 }
  0x89   :  { %vm255_vm2 = vmor %vm253_vm1, %vm254_vm0 }
  0x8a   :  { %v250_v23 = vsub.f32 1.0, %v249_v22 }
  0x8c   :  { %v251_v25 = vmul.f32 %v559_v21, %v250_v23 }
  0x8e   :  { %v252_v27 = vadd.f32 %v559_v21, %v251_v25 }
  0x90   :  { %v256_v29 = vsel %vm255_vm2, %v559_v21, %v252_v27 }
  0x91   :  { %v261_v30 = vsel %vm258_vm3, %v260_v28, %v256_v29 }
  0x92   :  { %v263_v31 = vmul.f32 %v261_v30, %v610_v0  ;;  %v264_v32 = vmul.f32 %v261_v30, %v242_v13  ;;  %v545_v0 = vld [vmem:[%s802_s5 + $0x8] sm:$0xff] }
  0x93   :  { %357 = vmatpush.bf16.msra.mxu3 %v545_v0 }
  0x94   :  { %268 = vperm.xlu1 %555, %v263_v31  }
  0x97   :  { %358 = vmatpush.bf16.msra.mxu3 %v544_v41 }
  0x9c   :  { %275 = vperm.xlu1 %555, %v264_v32  }
  0xa2   :  { %v217_v34 = vpop.f32.mrf.mxu1 }
  0xa3   :  { %v204_v36 = vpop.f32.mrf.mxu0  ;;  %v218_v47 = vadd.f32 %v217_v34, %v62_v43 }
  0xa4   :  { %v205_v49 = vadd.f32 %v204_v36, %v61_v45 }
  0xa5   :  { %v235_v51 = vmax.f32 %v218_v47, 0.0 }
  0xa6   :  { %v230_v35 = vpop.f32.mrf.mxu2  ;;  %v234_v53 = vmax.f32 %v205_v49, 0.0 }
  0xa7   :  { %v231_v48 = vadd.f32 %v230_v35, %v63_v44 }
  0xa9   :  { %v236_v52 = vmax.f32 %v231_v48, 0.0 }
  0xaa   :  { %v219_v38 = vpop.f32.mrf.mxu1 }
  0xab   :  { %v206_v40 = vpop.f32.mrf.mxu0 }
  0xae   :  { %v232_v39 = vpop.f32.mrf.mxu2 }
 0x106   :  { %v269_v46 = vpop.permute.xlu1 %268 }
 0x107   :  { %vm272_vm4 = vcmp.ge.f32.partialorder %v265_v50, %v269_v46  ;;  %vm271_vm7 = vcmp.lt.f32.partialorder %v265_v50, %v269_v46 }
 0x10e   :  { %v276_v54 = vpop.permute.xlu1 %275 }
 0x10f   :  { %vm278_vm5 = vcmp.lt.f32.partialorder %v265_v50, %v276_v54 }
 0x110   :  { %vm279_vm6 = vmand %vm272_vm4, %vm278_vm5 }
 0x111   :  { %v280_v55 = vsel %vm279_vm6, %v235_v51, %v236_v52 }
 0x112   :  { %v281_v56 = vsel %vm271_vm7, %v234_v53, %v280_v55 }
 0x113   :  { %v282_v57 = vpack.c.bf16 %v281_v56, %v281_v56 }
 0x115   :  { %359 = vmatmul.bf16.vlgmr.msra.gmra.mxu3 %v282_v57 }
 0x198   :  { %v360_v59 = vpop.f32.mrf.mxu3 }
 0x199   :  { %v361_v60 = vadd.f32 %v557_v58, %v360_v59 }
 0x19b   :  { %364 = vmax.xlane.f32.xlu2 %v361_v60 }
 0x1a0   :  { %v362_v61 = vpop.f32.mrf.mxu3 }
 0x20e   :  { %v365_v62 = vpop.xlane.xlu2 %364 }
 0x20f   :  { %v366_v63 = vsub.f32 %v361_v60, %v365_v62 }
 0x211   :  { %v367_v1 = vmul.f32 1.442695, %v366_v63 }
 0x213   :  { %560 = vpow2.f32 %v367_v1 }
 0x219   :  { %v561_v2 = vpop.eup %560 }
 0x21a   :  { %369 = vadd.xlane.f32.xlu2 %v561_v2 }
 0x28d   :  { %v370_v3 = vpop.xlane.xlu2 %369 }
 0x28e   :  { %562 = vrcp.f32 %v370_v3  ;;  %v382_v7 = vand.u32 2147483648, %v370_v3  ;;  %v380_v9 = vand.u32 2147483647, %v370_v3  ;;  %vm376_vm9 = vweird.f32 %v370_v3 }
 0x290   :  { %v383_v11 = vor.u32 1.1754944e-38, %v382_v7  ;;  %vm381_vm11 = vcmp.eq.f32.partialorder %v380_v9, 8.507059e+37 }
 0x294   :  { %v563_v4 = vpop.eup %562 }
 0x295   :  { %v372_v5 = vmul.f32 %v563_v4, %v370_v3  ;;  %vm377_vm8 = vweird.f32 %v563_v4 }
 0x296   :  { %vm378_vm10 = vmor %vm376_vm9, %vm377_vm8 }
 0x297   :  { %v373_v6 = vsub.f32 1.0, %v372_v5 }
 0x299   :  { %v374_v8 = vmul.f32 %v563_v4, %v373_v6 }
 0x29b   :  { %v375_v10 = vadd.f32 %v563_v4, %v374_v8 }
 0x29d   :  { %v379_v12 = vsel %vm378_vm10, %v563_v4, %v375_v10 }
 0x29e   :  { %v384_v13 = vsel %vm381_vm11, %v383_v11, %v379_v12 }
 0x29f   :  { %v386_v14 = vmul.f32 %v561_v2, %v384_v13 }
 0x2a1   :  { %387 = vst [vmem:[%s806_s7] sm:$0xff] %v386_v14 }

</bundles_post_ra>
